<compile_context>
chip_gen: v7x
topology: tpu7x:2x2x1
jax: 0.10.0
libtpu: 0.0.40
codegen_flags: <defaults>
</compile_context>

<pallas_src>
import jax
import jax.numpy as jnp
from jax import lax
from jax.experimental import pallas as pl
from jax.experimental.pallas import tpu as pltpu

LANE = 128
SUB = 8
CH = 32            # preferred accumulator / inner-slice height (rows)
TR_MAX = 4096      # rows per grid step (2 MiB per f32 input tile)
NP = 2             # leading chunks (shards across v7x's 2 TensorCores)
_PAD_X = -1e4      # finite filler: (1-0)*x + softplus(-x) == 0 EXACTLY for x=-1e4
                   # (do not lower |value| below ~90 or filler elements leak loss)

_DIM_SEM_CACHE = {"core_parallel": None}   # None = untried, True/False = decided


def _round_down(a, b):
    return (a // b) * b


def _cdiv(a, b):
    return -(-a // b)


def _make_kernel(*, tr, ch, k_steps, m_rows, binary_target):
    """Kernel factory (tr, ch, k_steps, m_rows are static Python ints)."""
    n_slices = tr // ch

    def kernel(x_ref, t_ref, a_ref, b_ref, nz_ref):
        # a_ref/b_ref/nz_ref are (ch,128) output blocks resident across the
        # 'arbitrary' (last) grid axis -> they act as accumulators.
        p = pl.program_id(0)
        k = pl.program_id(1)

        @pl.when(k == 0)
        def _init():
            a_ref[...] = jnp.zeros_like(a_ref)
            b_ref[...] = jnp.zeros_like(b_ref)
            nz_ref[...] = jnp.zeros_like(nz_ref)

        # Nominal first global row of this block (may be >= m_rows for the
        # clamped duplicate blocks of the last chunk -> fully masked below).
        blk_row0 = (p * k_steps + k) * tr

        def accumulate(masked, unroll):
            def slice_step(i, carry):
                a_acc, b_acc, nz_acc = carry
                r0 = pl.multiple_of(i * ch, ch)
                xs = x_ref[pl.ds(r0, ch), :].astype(jnp.float32)
                ts = t_ref[pl.ds(r0, ch), :].astype(jnp.float32)
                if masked:
                    rows = lax.broadcasted_iota(jnp.int32, (ch, LANE), 0)
                    valid = (blk_row0 + i * ch + rows) < m_rows
                    # Select safe values BEFORE the transcendentals so stale
                    # VMEM garbage in the partial block can never produce NaN.
                    xs = jnp.where(valid, xs, _PAD_X)
                    ts = jnp.where(valid, ts, 0.0)
                # softplus(-x), numerically stable
                sp = jnp.maximum(-xs, 0.0) + jnp.log1p(jnp.exp(-jnp.abs(xs)))
                a_acc = a_acc + ((1.0 - ts) * xs + sp)   # pos_weight-independent
                b_acc = b_acc + ts * sp                  # coeff of (pos_weight-1)
                if binary_target:
                    nz_acc = nz_acc + ts                 # sum(t) == #nonzero
                else:
                    nz_acc = nz_acc + (ts != 0.0).astype(jnp.float32)
                return a_acc, b_acc, nz_acc

            zeros = jnp.zeros((ch, LANE), jnp.float32)
            a_acc, b_acc, nz_acc = lax.fori_loop(
                0, n_slices, slice_step, (zeros, zeros, zeros), unroll=unroll)
            a_ref[...] += a_acc
            b_ref[...] += b_acc
            nz_ref[...] += nz_acc

        needs_mask = blk_row0 + tr > m_rows

        @pl.when(jnp.logical_not(needs_mask))
        def _hot():  # fully-valid block: no masking cost on the hot path
            accumulate(masked=False, unroll=min(8, n_slices))

        @pl.when(needs_mask)
        def _tail():  # runs at most once per chunk
            accumulate(masked=True, unroll=1)

    return kernel


def w_bce_with_logits_loss(input, target, reduction="mean",
                           assume_binary_target=False):
    """Pallas implementation of W_BCEWithLogitsLoss.forward."""
    n = int(input.size)
    x = input.reshape(-1)
    t = target.reshape(-1)

    # ---- layout: flat -> (M, 128), NO full-array pad in the common case ----
    rem = n % LANE
    if rem:
        # TODO(synk): the lane-ragged case still pays one O(n) pad copy; a
        # dedicated <128-element tail reduction in JAX glue would remove it.
        pad = LANE - rem
        x = jnp.pad(x, (0, pad), constant_values=_PAD_X)
        t = jnp.pad(t, (0, pad), constant_values=0)
    m_rows = x.size // LANE
    if m_rows < SUB:
        # Tiny input: pad cost is negligible; keep tiling (8,128)-aligned.
        extra = (SUB - m_rows) * LANE
        x = jnp.pad(x, (0, extra), constant_values=_PAD_X)
        t = jnp.pad(t, (0, extra), constant_values=0)
        m_rows = SUB

    x2 = x.reshape(m_rows, LANE)   # free (contiguous) reshapes
    t2 = t.reshape(m_rows, LANE)

    # ---- tiling ----
    tr = min(TR_MAX, max(SUB, _round_down(m_rows // NP, SUB)))  # rows/grid step
    ch = CH if tr % CH == 0 else SUB                            # slice/acc rows
    num_blocks = _cdiv(m_rows, tr)          # real (tr,128) row-blocks
    k_steps = _cdiv(num_blocks, NP)         # inner ('arbitrary') grid extent

    kernel = _make_kernel(tr=tr, ch=ch, k_steps=k_steps, m_rows=m_rows,
                          binary_target=assume_binary_target)

    # Clamp nominal block index so overshoot steps of the last chunk re-read a
    # valid block (their rows are fully masked in-kernel -> contribute 0).
    in_idx = lambda p, k: (jnp.minimum(p * k_steps + k, num_blocks - 1), 0)
    out_idx = lambda p, k: (p, 0)
    part = jax.ShapeDtypeStruct((NP * ch, LANE), jnp.float32)

    def build(dim_sems):
        return pl.pallas_call(
            kernel,
            out_shape=(part, part, part),
            grid_spec=pltpu.PrefetchScalarGridSpec(
                num_scalar_prefetch=0,
                grid=(NP, k_steps),
                in_specs=[pl.BlockSpec((tr, LANE), in_idx),
                          pl.BlockSpec((tr, LANE), in_idx)],
                out_specs=(pl.BlockSpec((ch, LANE), out_idx),
                           pl.BlockSpec((ch, LANE), out_idx),
                           pl.BlockSpec((ch, LANE), out_idx)),
            ),
            compiler_params=pltpu.CompilerParams(dimension_semantics=dim_sems),
        )

    # v7x: shard the leading axis across both TensorCores (CORE_PARALLEL);
    # fall back to plain "parallel" if this chip/compiler rejects it.
    a_p = b_p = nz_p = None
    if _DIM_SEM_CACHE["core_parallel"] is not False:
        try:
            a_p, b_p, nz_p = build(
                (pltpu.CORE_PARALLEL, pltpu.ARBITRARY))(x2, t2)
            _DIM_SEM_CACHE["core_parallel"] = True
        except Exception:
            _DIM_SEM_CACHE["core_parallel"] = False
    if a_p is None:
        a_p, b_p, nz_p = build(("parallel", "arbitrary"))(x2, t2)

    # ---- scalar glue ----
    A = jnp.sum(a_p)
    Bw = jnp.sum(b_p)
    nz = jnp.sum(nz_p)

    n_f = jnp.float32(n)
    # pos_weight = (#zeros)/(#nonzeros); guarded so an all-zero target gives a
    # finite result (plain BCE) instead of PyTorch's NaN.
    pos_weight = jnp.where(nz > 0, (n_f - nz) / jnp.maximum(nz, 1.0), 1.0)

    loss_sum = A + (pos_weight - 1.0) * Bw

    if reduction == "mean":
        return loss_sum / n_f
    elif reduction == "sum":
        return loss_sum
    else:
        # TODO(synk): reduction='none' (per-element output) not wired here.
        raise NotImplementedError(f"reduction={reduction!r}")


def _reference(input, target):
    x = input.astype(jnp.float32)
    t = target.astype(jnp.float32)
    pw = jnp.sum(t == 0) / jnp.sum(t != 0)
    log_w = 1.0 + (pw - 1.0) * t
    loss = (1.0 - t) * x + log_w * (jnp.maximum(-x, 0.0)
                                    + jnp.log1p(jnp.exp(-jnp.abs(x))))
    return jnp.mean(loss)


if __name__ == "__main__":
    key = jax.random.PRNGKey(0)
    k1, k2, k3, k4 = jax.random.split(key, 4)

    # Case 1: NCHW batch=2, channels=4, spatial=16x16 (n=2048, lane aligned).
    x1 = jax.random.normal(k1, (2, 4, 16, 16), dtype=jnp.float32)
    t1 = (jax.random.uniform(k2, (2, 4, 16, 16)) > 0.7).astype(jnp.float32)
    out1 = jax.block_until_ready(w_bce_with_logits_loss(x1, t1))
    ref1 = _reference(x1, t1)
    assert jnp.allclose(out1, ref1, rtol=1e-5, atol=1e-5), (out1, ref1)

    # Same input through the binary-target fast path.
    out1b = jax.block_until_ready(
        w_bce_with_logits_loss(x1, t1, assume_binary_target=True))
    assert jnp.allclose(out1b, ref1, rtol=1e-5, atol=1e-5), (out1b, ref1)

    # Case 2: n=1536 -> ragged row-block, exercises the in-kernel mask path.
    x2_ = jax.random.normal(k3, (2, 3, 16, 16), dtype=jnp.float32)
    t2_ = (jax.random.uniform(k4, (2, 3, 16, 16)) > 0.5).astype(jnp.float32)
    out2 = jax.block_until_ready(w_bce_with_logits_loss(x2_, t2_))
    ref2 = _reference(x2_, t2_)
    assert jnp.allclose(out2, ref2, rtol=1e-5, atol=1e-5), (out2, ref2)

    print("KERNEL_OK")
</pallas_src>

<mosaic_0001>
module attributes {stable_mosaic.version = 11 : i64} {
  func.func @kernel(%arg0: i32, %arg1: i32, %arg2: memref<8x128xf32, #tpu.memory_space<vmem>>, %arg3: memref<8x128xf32, #tpu.memory_space<vmem>>, %arg4: memref<8x128xf32, #tpu.memory_space<vmem>>, %arg5: memref<8x128xf32, #tpu.memory_space<vmem>>, %arg6: memref<8x128xf32, #tpu.memory_space<vmem>>) attributes {dimension_semantics = [#tpu.dimension_semantics<core_parallel>, #tpu.dimension_semantics<arbitrary>], iteration_bounds = array<i64: 2, 1>, scalar_prefetch = 0 : i64, scratch_operands = 0 : i64, tpu.core_type = #tpu.core_type<tc>, window_params = [{transform_indices = @transform_0, window_bounds = array<i64: 8, 128>}, {transform_indices = @transform_1, window_bounds = array<i64: 8, 128>}, {transform_indices = @transform_2, window_bounds = array<i64: 8, 128>}, {transform_indices = @transform_3, window_bounds = array<i64: 8, 128>}, {transform_indices = @transform_4, window_bounds = array<i64: 8, 128>}]} {
    %c0_i32 = arith.constant 0 : i32
    %0 = arith.cmpi eq, %arg1, %c0_i32 : i32
    %1 = arith.extui %0 : i1 to i32
    %c0_i32_0 = arith.constant 0 : i32
    %2 = arith.cmpi ne, %1, %c0_i32_0 : i32
    scf.if %2 {
      %cst = arith.constant 0.000000e+00 : f32
      %13 = vector.broadcast %cst : f32 to vector<8x128xf32>
      %c0 = arith.constant 0 : index
      %c0_4 = arith.constant 0 : index
      %14 = vector.load %arg4[%c0, %c0_4] : memref<8x128xf32, #tpu.memory_space<vmem>>, vector<8x128xf32>
      tpu.vector_store %arg4[%c0, %c0_4], %13 {strides = array<i32>} : memref<8x128xf32, #tpu.memory_space<vmem>>, vector<8x128xf32>,
      %cst_5 = arith.constant 0.000000e+00 : f32
      %15 = vector.broadcast %cst_5 : f32 to vector<8x128xf32>
      %c0_6 = arith.constant 0 : index
      %c0_7 = arith.constant 0 : index
      %16 = vector.load %arg5[%c0_6, %c0_7] : memref<8x128xf32, #tpu.memory_space<vmem>>, vector<8x128xf32>
      tpu.vector_store %arg5[%c0_6, %c0_7], %15 {strides = array<i32>} : memref<8x128xf32, #tpu.memory_space<vmem>>, vector<8x128xf32>,
      %cst_8 = arith.constant 0.000000e+00 : f32
      %17 = vector.broadcast %cst_8 : f32 to vector<8x128xf32>
      %c0_9 = arith.constant 0 : index
      %c0_10 = arith.constant 0 : index
      %18 = vector.load %arg6[%c0_9, %c0_10] : memref<8x128xf32, #tpu.memory_space<vmem>>, vector<8x128xf32>
      tpu.vector_store %arg6[%c0_9, %c0_10], %17 {strides = array<i32>} : memref<8x128xf32, #tpu.memory_space<vmem>>, vector<8x128xf32>,
    } else {
    }
    %c1_i32 = arith.constant 1 : i32
    %3 = arith.muli %arg0, %c1_i32 : i32
    %4 = arith.addi %3, %arg1 : i32
    %c8_i32 = arith.constant 8 : i32
    %5 = arith.muli %4, %c8_i32 : i32
    %c8_i32_1 = arith.constant 8 : i32
    %6 = arith.addi %5, %c8_i32_1 : i32
    %c16_i32 = arith.constant 16 : i32
    %7 = arith.cmpi sgt, %6, %c16_i32 : i32
    %true = arith.constant true
    %8 = arith.xori %7, %true : i1
    %9 = arith.extui %8 : i1 to i32
    %c0_i32_2 = arith.constant 0 : i32
    %10 = arith.cmpi ne, %9, %c0_i32_2 : i32
    scf.if %10 {
      %cst = arith.constant 0.000000e+00 : f32
      %13 = vector.broadcast %cst : f32 to vector<8x128xf32>
      %c0_i32_4 = arith.constant 0 : i32
      %c8_i32_5 = arith.constant 8 : i32
      %14 = arith.muli %c0_i32_4, %c8_i32_5 : i32
      %15 = tpu.assume_multiple %14, 8 : i32
      %16 = arith.index_cast %15 : i32 to index
      %c0 = arith.constant 0 : index
      %17 = vector.load %arg2[%16, %c0] : memref<8x128xf32, #tpu.memory_space<vmem>>, vector<8x128xf32>
      %18 = arith.index_cast %15 : i32 to index
      %c0_6 = arith.constant 0 : index
      %19 = vector.load %arg3[%18, %c0_6] : memref<8x128xf32, #tpu.memory_space<vmem>>, vector<8x128xf32>
      %cst_7 = arith.constant 0.000000e+00 : f32
      %20 = vector.broadcast %cst_7 : f32 to vector<8x128xf32>
      %21 = arith.subf %20, %17 : vector<8x128xf32>
      %cst_8 = arith.constant 0.000000e+00 : f32
      %22 = vector.broadcast %cst_8 : f32 to vector<8x128xf32>
      %23 = arith.maximumf %21, %22 : vector<8x128xf32>
      %24 = math.absf %17 : vector<8x128xf32>
      %cst_9 = arith.constant 0.000000e+00 : f32
      %25 = vector.broadcast %cst_9 : f32 to vector<8x128xf32>
      %26 = arith.subf %25, %24 : vector<8x128xf32>
      %27 = math.exp %26 : vector<8x128xf32>
      %28 = math.log1p %27 : vector<8x128xf32>
      %29 = arith.addf %23, %28 : vector<8x128xf32>
      %cst_10 = arith.constant 1.000000e+00 : f32
      %30 = vector.broadcast %cst_10 : f32 to vector<8x128xf32>
      %31 = arith.subf %30, %19 : vector<8x128xf32>
      %32 = arith.mulf %31, %17 : vector<8x128xf32>
      %33 = arith.addf %32, %29 : vector<8x128xf32>
      %34 = arith.addf %13, %33 : vector<8x128xf32>
      %35 = arith.mulf %19, %29 : vector<8x128xf32>
      %36 = arith.addf %13, %35 : vector<8x128xf32>
      %cst_11 = arith.constant 0.000000e+00 : f32
      %37 = vector.broadcast %cst_11 : f32 to vector<8x128xf32>
      %38 = arith.cmpf one, %19, %37 : vector<8x128xf32>
      %39 = arith.extui %38 : vector<8x128xi1> to vector<8x128xi32>
      %40 = arith.sitofp %39 : vector<8x128xi32> to vector<8x128xf32>
      %41 = arith.addf %13, %40 : vector<8x128xf32>
      %c1_i32_12 = arith.constant 1 : i32
      %c0_13 = arith.constant 0 : index
      %c0_14 = arith.constant 0 : index
      %42 = vector.load %arg4[%c0_13, %c0_14] : memref<8x128xf32, #tpu.memory_space<vmem>>, vector<8x128xf32>
      %43 = arith.addf %42, %34 : vector<8x128xf32>
      %c0_15 = arith.constant 0 : index
      %c0_16 = arith.constant 0 : index
      %44 = vector.load %arg4[%c0_15, %c0_16] : memref<8x128xf32, #tpu.memory_space<vmem>>, vector<8x128xf32>
      tpu.vector_store %arg4[%c0_15, %c0_16], %43 {strides = array<i32>} : memref<8x128xf32, #tpu.memory_space<vmem>>, vector<8x128xf32>,
      %c0_17 = arith.constant 0 : index
      %c0_18 = arith.constant 0 : index
      %45 = vector.load %arg5[%c0_17, %c0_18] : memref<8x128xf32, #tpu.memory_space<vmem>>, vector<8x128xf32>
      %46 = arith.addf %45, %36 : vector<8x128xf32>
      %c0_19 = arith.constant 0 : index
      %c0_20 = arith.constant 0 : index
      %47 = vector.load %arg5[%c0_19, %c0_20] : memref<8x128xf32, #tpu.memory_space<vmem>>, vector<8x128xf32>
      tpu.vector_store %arg5[%c0_19, %c0_20], %46 {strides = array<i32>} : memref<8x128xf32, #tpu.memory_space<vmem>>, vector<8x128xf32>,
      %c0_21 = arith.constant 0 : index
      %c0_22 = arith.constant 0 : index
      %48 = vector.load %arg6[%c0_21, %c0_22] : memref<8x128xf32, #tpu.memory_space<vmem>>, vector<8x128xf32>
      %49 = arith.addf %48, %41 : vector<8x128xf32>
      %c0_23 = arith.constant 0 : index
      %c0_24 = arith.constant 0 : index
      %50 = vector.load %arg6[%c0_23, %c0_24] : memref<8x128xf32, #tpu.memory_space<vmem>>, vector<8x128xf32>
      tpu.vector_store %arg6[%c0_23, %c0_24], %49 {strides = array<i32>} : memref<8x128xf32, #tpu.memory_space<vmem>>, vector<8x128xf32>,
    } else {
    }
    %11 = arith.extui %7 : i1 to i32
    %c0_i32_3 = arith.constant 0 : i32
    %12 = arith.cmpi ne, %11, %c0_i32_3 : i32
    scf.if %12 {
      %cst = arith.constant 0.000000e+00 : f32
      %13 = vector.broadcast %cst : f32 to vector<8x128xf32>
      %c0_i32_4 = arith.constant 0 : i32
      %c8_i32_5 = arith.constant 8 : i32
      %14 = arith.muli %c0_i32_4, %c8_i32_5 : i32
      %15 = tpu.assume_multiple %14, 8 : i32
      %16 = arith.index_cast %15 : i32 to index
      %c0 = arith.constant 0 : index
      %17 = vector.load %arg2[%16, %c0] : memref<8x128xf32, #tpu.memory_space<vmem>>, vector<8x128xf32>
      %18 = arith.index_cast %15 : i32 to index
      %c0_6 = arith.constant 0 : index
      %19 = vector.load %arg3[%18, %c0_6] : memref<8x128xf32, #tpu.memory_space<vmem>>, vector<8x128xf32>
      %20 = tpu.iota {dimensions = array<i32: 0>} : vector<8x128xi32>
      %c8_i32_7 = arith.constant 8 : i32
      %21 = arith.muli %c0_i32_4, %c8_i32_7 : i32
      %22 = arith.addi %5, %21 : i32
      %23 = vector.broadcast %22 : i32 to vector<8x128xi32>
      %24 = arith.addi %23, %20 : vector<8x128xi32>
      %c16_i32_8 = arith.constant 16 : i32
      %25 = vector.broadcast %c16_i32_8 : i32 to vector<8x128xi32>
      %26 = arith.cmpi slt, %24, %25 : vector<8x128xi32>
      %cst_9 = arith.constant -1.000000e+04 : f32
      %27 = vector.broadcast %cst_9 : f32 to vector<8x128xf32>
      %28 = arith.select %26, %17, %27 : vector<8x128xi1>, vector<8x128xf32>
      %cst_10 = arith.constant 0.000000e+00 : f32
      %29 = vector.broadcast %cst_10 : f32 to vector<8x128xf32>
      %30 = arith.select %26, %19, %29 : vector<8x128xi1>, vector<8x128xf32>
      %cst_11 = arith.constant 0.000000e+00 : f32
      %31 = vector.broadcast %cst_11 : f32 to vector<8x128xf32>
      %32 = arith.subf %31, %28 : vector<8x128xf32>
      %cst_12 = arith.constant 0.000000e+00 : f32
      %33 = vector.broadcast %cst_12 : f32 to vector<8x128xf32>
      %34 = arith.maximumf %32, %33 : vector<8x128xf32>
      %35 = math.absf %28 : vector<8x128xf32>
      %cst_13 = arith.constant 0.000000e+00 : f32
      %36 = vector.broadcast %cst_13 : f32 to vector<8x128xf32>
      %37 = arith.subf %36, %35 : vector<8x128xf32>
      %38 = math.exp %37 : vector<8x128xf32>
      %39 = math.log1p %38 : vector<8x128xf32>
      %40 = arith.addf %34, %39 : vector<8x128xf32>
      %cst_14 = arith.constant 1.000000e+00 : f32
      %41 = vector.broadcast %cst_14 : f32 to vector<8x128xf32>
      %42 = arith.subf %41, %30 : vector<8x128xf32>
      %43 = arith.mulf %42, %28 : vector<8x128xf32>
      %44 = arith.addf %43, %40 : vector<8x128xf32>
      %45 = arith.addf %13, %44 : vector<8x128xf32>
      %46 = arith.mulf %30, %40 : vector<8x128xf32>
      %47 = arith.addf %13, %46 : vector<8x128xf32>
      %cst_15 = arith.constant 0.000000e+00 : f32
      %48 = vector.broadcast %cst_15 : f32 to vector<8x128xf32>
      %49 = arith.cmpf one, %30, %48 : vector<8x128xf32>
      %50 = arith.extui %49 : vector<8x128xi1> to vector<8x128xi32>
      %51 = arith.sitofp %50 : vector<8x128xi32> to vector<8x128xf32>
      %52 = arith.addf %13, %51 : vector<8x128xf32>
      %c1_i32_16 = arith.constant 1 : i32
      %c0_17 = arith.constant 0 : index
      %c0_18 = arith.constant 0 : index
      %53 = vector.load %arg4[%c0_17, %c0_18] : memref<8x128xf32, #tpu.memory_space<vmem>>, vector<8x128xf32>
      %54 = arith.addf %53, %45 : vector<8x128xf32>
      %c0_19 = arith.constant 0 : index
      %c0_20 = arith.constant 0 : index
      %55 = vector.load %arg4[%c0_19, %c0_20] : memref<8x128xf32, #tpu.memory_space<vmem>>, vector<8x128xf32>
      tpu.vector_store %arg4[%c0_19, %c0_20], %54 {strides = array<i32>} : memref<8x128xf32, #tpu.memory_space<vmem>>, vector<8x128xf32>,
      %c0_21 = arith.constant 0 : index
      %c0_22 = arith.constant 0 : index
      %56 = vector.load %arg5[%c0_21, %c0_22] : memref<8x128xf32, #tpu.memory_space<vmem>>, vector<8x128xf32>
      %57 = arith.addf %56, %47 : vector<8x128xf32>
      %c0_23 = arith.constant 0 : index
      %c0_24 = arith.constant 0 : index
      %58 = vector.load %arg5[%c0_23, %c0_24] : memref<8x128xf32, #tpu.memory_space<vmem>>, vector<8x128xf32>
      tpu.vector_store %arg5[%c0_23, %c0_24], %57 {strides = array<i32>} : memref<8x128xf32, #tpu.memory_space<vmem>>, vector<8x128xf32>,
      %c0_25 = arith.constant 0 : index
      %c0_26 = arith.constant 0 : index
      %59 = vector.load %arg6[%c0_25, %c0_26] : memref<8x128xf32, #tpu.memory_space<vmem>>, vector<8x128xf32>
      %60 = arith.addf %59, %52 : vector<8x128xf32>
      %c0_27 = arith.constant 0 : index
      %c0_28 = arith.constant 0 : index
      %61 = vector.load %arg6[%c0_27, %c0_28] : memref<8x128xf32, #tpu.memory_space<vmem>>, vector<8x128xf32>
      tpu.vector_store %arg6[%c0_27, %c0_28], %60 {strides = array<i32>} : memref<8x128xf32, #tpu.memory_space<vmem>>, vector<8x128xf32>,
    } else {
    }
    return
  }
  func.func @transform_0(%arg0: i32, %arg1: i32) -> (i32, i32) {
    %c1_i32 = arith.constant 1 : i32
    %0 = arith.muli %arg0, %c1_i32 : i32
    %1 = arith.addi %0, %arg1 : i32
    %c1_i32_0 = arith.constant 1 : i32
    %2 = arith.minsi %1, %c1_i32_0 : i32
    %c0_i32 = arith.constant 0 : i32
    %c0_i32_1 = arith.constant 0 : i32
    return %2, %c0_i32 : i32, i32
  }
  func.func @transform_1(%arg0: i32, %arg1: i32) -> (i32, i32) {
    %c1_i32 = arith.constant 1 : i32
    %0 = arith.muli %arg0, %c1_i32 : i32
    %1 = arith.addi %0, %arg1 : i32
    %c1_i32_0 = arith.constant 1 : i32
    %2 = arith.minsi %1, %c1_i32_0 : i32
    %c0_i32 = arith.constant 0 : i32
    %c0_i32_1 = arith.constant 0 : i32
    return %2, %c0_i32 : i32, i32
  }
  func.func @transform_2(%arg0: i32, %arg1: i32) -> (i32, i32) {
    %c0_i32 = arith.constant 0 : i32
    %c0_i32_0 = arith.constant 0 : i32
    return %arg0, %c0_i32 : i32, i32
  }
  func.func @transform_3(%arg0: i32, %arg1: i32) -> (i32, i32) {
    %c0_i32 = arith.constant 0 : i32
    %c0_i32_0 = arith.constant 0 : i32
    return %arg0, %c0_i32 : i32, i32
  }
  func.func @transform_4(%arg0: i32, %arg1: i32) -> (i32, i32) {
    %c0_i32 = arith.constant 0 : i32
    %c0_i32_0 = arith.constant 0 : i32
    return %arg0, %c0_i32 : i32, i32
  }
}

module attributes {stable_mosaic.version = 11 : i64} {
  func.func @kernel(%arg0: i32, %arg1: i32, %arg2: memref<8x128xf32, #tpu.memory_space<vmem>>, %arg3: memref<8x128xf32, #tpu.memory_space<vmem>>, %arg4: memref<8x128xf32, #tpu.memory_space<vmem>>, %arg5: memref<8x128xf32, #tpu.memory_space<vmem>>, %arg6: memref<8x128xf32, #tpu.memory_space<vmem>>) attributes {dimension_semantics = [#tpu.dimension_semantics<parallel>, #tpu.dimension_semantics<arbitrary>], iteration_bounds = array<i64: 2, 1>, scalar_prefetch = 0 : i64, scratch_operands = 0 : i64, tpu.core_type = #tpu.core_type<tc>, window_params = [{transform_indices = @transform_0, window_bounds = array<i64: 8, 128>}, {transform_indices = @transform_1, window_bounds = array<i64: 8, 128>}, {transform_indices = @transform_2, window_bounds = array<i64: 8, 128>}, {transform_indices = @transform_3, window_bounds = array<i64: 8, 128>}, {transform_indices = @transform_4, window_bounds = array<i64: 8, 128>}]} {
    %c0_i32 = arith.constant 0 : i32
    %0 = arith.cmpi eq, %arg1, %c0_i32 : i32
    %1 = arith.extui %0 : i1 to i32
    %c0_i32_0 = arith.constant 0 : i32
    %2 = arith.cmpi ne, %1, %c0_i32_0 : i32
    scf.if %2 {
      %cst = arith.constant 0.000000e+00 : f32
      %13 = vector.broadcast %cst : f32 to vector<8x128xf32>
      %c0 = arith.constant 0 : index
      %c0_4 = arith.constant 0 : index
      %14 = vector.load %arg4[%c0, %c0_4] : memref<8x128xf32, #tpu.memory_space<vmem>>, vector<8x128xf32>
      tpu.vector_store %arg4[%c0, %c0_4], %13 {strides = array<i32>} : memref<8x128xf32, #tpu.memory_space<vmem>>, vector<8x128xf32>,
      %cst_5 = arith.constant 0.000000e+00 : f32
      %15 = vector.broadcast %cst_5 : f32 to vector<8x128xf32>
      %c0_6 = arith.constant 0 : index
      %c0_7 = arith.constant 0 : index
      %16 = vector.load %arg5[%c0_6, %c0_7] : memref<8x128xf32, #tpu.memory_space<vmem>>, vector<8x128xf32>
      tpu.vector_store %arg5[%c0_6, %c0_7], %15 {strides = array<i32>} : memref<8x128xf32, #tpu.memory_space<vmem>>, vector<8x128xf32>,
      %cst_8 = arith.constant 0.000000e+00 : f32
      %17 = vector.broadcast %cst_8 : f32 to vector<8x128xf32>
      %c0_9 = arith.constant 0 : index
      %c0_10 = arith.constant 0 : index
      %18 = vector.load %arg6[%c0_9, %c0_10] : memref<8x128xf32, #tpu.memory_space<vmem>>, vector<8x128xf32>
      tpu.vector_store %arg6[%c0_9, %c0_10], %17 {strides = array<i32>} : memref<8x128xf32, #tpu.memory_space<vmem>>, vector<8x128xf32>,
    } else {
    }
    %c1_i32 = arith.constant 1 : i32
    %3 = arith.muli %arg0, %c1_i32 : i32
    %4 = arith.addi %3, %arg1 : i32
    %c8_i32 = arith.constant 8 : i32
    %5 = arith.muli %4, %c8_i32 : i32
    %c8_i32_1 = arith.constant 8 : i32
    %6 = arith.addi %5, %c8_i32_1 : i32
    %c16_i32 = arith.constant 16 : i32
    %7 = arith.cmpi sgt, %6, %c16_i32 : i32
    %true = arith.constant true
    %8 = arith.xori %7, %true : i1
    %9 = arith.extui %8 : i1 to i32
    %c0_i32_2 = arith.constant 0 : i32
    %10 = arith.cmpi ne, %9, %c0_i32_2 : i32
    scf.if %10 {
      %cst = arith.constant 0.000000e+00 : f32
      %13 = vector.broadcast %cst : f32 to vector<8x128xf32>
      %c0_i32_4 = arith.constant 0 : i32
      %c8_i32_5 = arith.constant 8 : i32
      %14 = arith.muli %c0_i32_4, %c8_i32_5 : i32
      %15 = tpu.assume_multiple %14, 8 : i32
      %16 = arith.index_cast %15 : i32 to index
      %c0 = arith.constant 0 : index
      %17 = vector.load %arg2[%16, %c0] : memref<8x128xf32, #tpu.memory_space<vmem>>, vector<8x128xf32>
      %18 = arith.index_cast %15 : i32 to index
      %c0_6 = arith.constant 0 : index
      %19 = vector.load %arg3[%18, %c0_6] : memref<8x128xf32, #tpu.memory_space<vmem>>, vector<8x128xf32>
      %cst_7 = arith.constant 0.000000e+00 : f32
      %20 = vector.broadcast %cst_7 : f32 to vector<8x128xf32>
      %21 = arith.subf %20, %17 : vector<8x128xf32>
      %cst_8 = arith.constant 0.000000e+00 : f32
      %22 = vector.broadcast %cst_8 : f32 to vector<8x128xf32>
      %23 = arith.maximumf %21, %22 : vector<8x128xf32>
      %24 = math.absf %17 : vector<8x128xf32>
      %cst_9 = arith.constant 0.000000e+00 : f32
      %25 = vector.broadcast %cst_9 : f32 to vector<8x128xf32>
      %26 = arith.subf %25, %24 : vector<8x128xf32>
      %27 = math.exp %26 : vector<8x128xf32>
      %28 = math.log1p %27 : vector<8x128xf32>
      %29 = arith.addf %23, %28 : vector<8x128xf32>
      %cst_10 = arith.constant 1.000000e+00 : f32
      %30 = vector.broadcast %cst_10 : f32 to vector<8x128xf32>
      %31 = arith.subf %30, %19 : vector<8x128xf32>
      %32 = arith.mulf %31, %17 : vector<8x128xf32>
      %33 = arith.addf %32, %29 : vector<8x128xf32>
      %34 = arith.addf %13, %33 : vector<8x128xf32>
      %35 = arith.mulf %19, %29 : vector<8x128xf32>
      %36 = arith.addf %13, %35 : vector<8x128xf32>
      %cst_11 = arith.constant 0.000000e+00 : f32
      %37 = vector.broadcast %cst_11 : f32 to vector<8x128xf32>
      %38 = arith.cmpf one, %19, %37 : vector<8x128xf32>
      %39 = arith.extui %38 : vector<8x128xi1> to vector<8x128xi32>
      %40 = arith.sitofp %39 : vector<8x128xi32> to vector<8x128xf32>
      %41 = arith.addf %13, %40 : vector<8x128xf32>
      %c1_i32_12 = arith.constant 1 : i32
      %c0_13 = arith.constant 0 : index
      %c0_14 = arith.constant 0 : index
      %42 = vector.load %arg4[%c0_13, %c0_14] : memref<8x128xf32, #tpu.memory_space<vmem>>, vector<8x128xf32>
      %43 = arith.addf %42, %34 : vector<8x128xf32>
      %c0_15 = arith.constant 0 : index
      %c0_16 = arith.constant 0 : index
      %44 = vector.load %arg4[%c0_15, %c0_16] : memref<8x128xf32, #tpu.memory_space<vmem>>, vector<8x128xf32>
      tpu.vector_store %arg4[%c0_15, %c0_16], %43 {strides = array<i32>} : memref<8x128xf32, #tpu.memory_space<vmem>>, vector<8x128xf32>,
      %c0_17 = arith.constant 0 : index
      %c0_18 = arith.constant 0 : index
      %45 = vector.load %arg5[%c0_17, %c0_18] : memref<8x128xf32, #tpu.memory_space<vmem>>, vector<8x128xf32>
      %46 = arith.addf %45, %36 : vector<8x128xf32>
      %c0_19 = arith.constant 0 : index
      %c0_20 = arith.constant 0 : index
      %47 = vector.load %arg5[%c0_19, %c0_20] : memref<8x128xf32, #tpu.memory_space<vmem>>, vector<8x128xf32>
      tpu.vector_store %arg5[%c0_19, %c0_20], %46 {strides = array<i32>} : memref<8x128xf32, #tpu.memory_space<vmem>>, vector<8x128xf32>,
      %c0_21 = arith.constant 0 : index
      %c0_22 = arith.constant 0 : index
      %48 = vector.load %arg6[%c0_21, %c0_22] : memref<8x128xf32, #tpu.memory_space<vmem>>, vector<8x128xf32>
      %49 = arith.addf %48, %41 : vector<8x128xf32>
      %c0_23 = arith.constant 0 : index
      %c0_24 = arith.constant 0 : index
      %50 = vector.load %arg6[%c0_23, %c0_24] : memref<8x128xf32, #tpu.memory_space<vmem>>, vector<8x128xf32>
      tpu.vector_store %arg6[%c0_23, %c0_24], %49 {strides = array<i32>} : memref<8x128xf32, #tpu.memory_space<vmem>>, vector<8x128xf32>,
    } else {
    }
    %11 = arith.extui %7 : i1 to i32
    %c0_i32_3 = arith.constant 0 : i32
    %12 = arith.cmpi ne, %11, %c0_i32_3 : i32
    scf.if %12 {
      %cst = arith.constant 0.000000e+00 : f32
      %13 = vector.broadcast %cst : f32 to vector<8x128xf32>
      %c0_i32_4 = arith.constant 0 : i32
      %c8_i32_5 = arith.constant 8 : i32
      %14 = arith.muli %c0_i32_4, %c8_i32_5 : i32
      %15 = tpu.assume_multiple %14, 8 : i32
      %16 = arith.index_cast %15 : i32 to index
      %c0 = arith.constant 0 : index
      %17 = vector.load %arg2[%16, %c0] : memref<8x128xf32, #tpu.memory_space<vmem>>, vector<8x128xf32>
      %18 = arith.index_cast %15 : i32 to index
      %c0_6 = arith.constant 0 : index
      %19 = vector.load %arg3[%18, %c0_6] : memref<8x128xf32, #tpu.memory_space<vmem>>, vector<8x128xf32>
      %20 = tpu.iota {dimensions = array<i32: 0>} : vector<8x128xi32>
      %c8_i32_7 = arith.constant 8 : i32
      %21 = arith.muli %c0_i32_4, %c8_i32_7 : i32
      %22 = arith.addi %5, %21 : i32
      %23 = vector.broadcast %22 : i32 to vector<8x128xi32>
      %24 = arith.addi %23, %20 : vector<8x128xi32>
      %c16_i32_8 = arith.constant 16 : i32
      %25 = vector.broadcast %c16_i32_8 : i32 to vector<8x128xi32>
      %26 = arith.cmpi slt, %24, %25 : vector<8x128xi32>
      %cst_9 = arith.constant -1.000000e+04 : f32
      %27 = vector.broadcast %cst_9 : f32 to vector<8x128xf32>
      %28 = arith.select %26, %17, %27 : vector<8x128xi1>, vector<8x128xf32>
      %cst_10 = arith.constant 0.000000e+00 : f32
      %29 = vector.broadcast %cst_10 : f32 to vector<8x128xf32>
      %30 = arith.select %26, %19, %29 : vector<8x128xi1>, vector<8x128xf32>
      %cst_11 = arith.constant 0.000000e+00 : f32
      %31 = vector.broadcast %cst_11 : f32 to vector<8x128xf32>
      %32 = arith.subf %31, %28 : vector<8x128xf32>
      %cst_12 = arith.constant 0.000000e+00 : f32
      %33 = vector.broadcast %cst_12 : f32 to vector<8x128xf32>
      %34 = arith.maximumf %32, %33 : vector<8x128xf32>
      %35 = math.absf %28 : vector<8x128xf32>
      %cst_13 = arith.constant 0.000000e+00 : f32
      %36 = vector.broadcast %cst_13 : f32 to vector<8x128xf32>
      %37 = arith.subf %36, %35 : vector<8x128xf32>
      %38 = math.exp %37 : vector<8x128xf32>
      %39 = math.log1p %38 : vector<8x128xf32>
      %40 = arith.addf %34, %39 : vector<8x128xf32>
      %cst_14 = arith.constant 1.000000e+00 : f32
      %41 = vector.broadcast %cst_14 : f32 to vector<8x128xf32>
      %42 = arith.subf %41, %30 : vector<8x128xf32>
      %43 = arith.mulf %42, %28 : vector<8x128xf32>
      %44 = arith.addf %43, %40 : vector<8x128xf32>
      %45 = arith.addf %13, %44 : vector<8x128xf32>
      %46 = arith.mulf %30, %40 : vector<8x128xf32>
      %47 = arith.addf %13, %46 : vector<8x128xf32>
      %cst_15 = arith.constant 0.000000e+00 : f32
      %48 = vector.broadcast %cst_15 : f32 to vector<8x128xf32>
      %49 = arith.cmpf one, %30, %48 : vector<8x128xf32>
      %50 = arith.extui %49 : vector<8x128xi1> to vector<8x128xi32>
      %51 = arith.sitofp %50 : vector<8x128xi32> to vector<8x128xf32>
      %52 = arith.addf %13, %51 : vector<8x128xf32>
      %c1_i32_16 = arith.constant 1 : i32
      %c0_17 = arith.constant 0 : index
      %c0_18 = arith.constant 0 : index
      %53 = vector.load %arg4[%c0_17, %c0_18] : memref<8x128xf32, #tpu.memory_space<vmem>>, vector<8x128xf32>
      %54 = arith.addf %53, %45 : vector<8x128xf32>
      %c0_19 = arith.constant 0 : index
      %c0_20 = arith.constant 0 : index
      %55 = vector.load %arg4[%c0_19, %c0_20] : memref<8x128xf32, #tpu.memory_space<vmem>>, vector<8x128xf32>
      tpu.vector_store %arg4[%c0_19, %c0_20], %54 {strides = array<i32>} : memref<8x128xf32, #tpu.memory_space<vmem>>, vector<8x128xf32>,
      %c0_21 = arith.constant 0 : index
      %c0_22 = arith.constant 0 : index
      %56 = vector.load %arg5[%c0_21, %c0_22] : memref<8x128xf32, #tpu.memory_space<vmem>>, vector<8x128xf32>
      %57 = arith.addf %56, %47 : vector<8x128xf32>
      %c0_23 = arith.constant 0 : index
      %c0_24 = arith.constant 0 : index
      %58 = vector.load %arg5[%c0_23, %c0_24] : memref<8x128xf32, #tpu.memory_space<vmem>>, vector<8x128xf32>
      tpu.vector_store %arg5[%c0_23, %c0_24], %57 {strides = array<i32>} : memref<8x128xf32, #tpu.memory_space<vmem>>, vector<8x128xf32>,
      %c0_25 = arith.constant 0 : index
      %c0_26 = arith.constant 0 : index
      %59 = vector.load %arg6[%c0_25, %c0_26] : memref<8x128xf32, #tpu.memory_space<vmem>>, vector<8x128xf32>
      %60 = arith.addf %59, %52 : vector<8x128xf32>
      %c0_27 = arith.constant 0 : index
      %c0_28 = arith.constant 0 : index
      %61 = vector.load %arg6[%c0_27, %c0_28] : memref<8x128xf32, #tpu.memory_space<vmem>>, vector<8x128xf32>
      tpu.vector_store %arg6[%c0_27, %c0_28], %60 {strides = array<i32>} : memref<8x128xf32, #tpu.memory_space<vmem>>, vector<8x128xf32>,
    } else {
    }
    return
  }
  func.func @transform_0(%arg0: i32, %arg1: i32) -> (i32, i32) {
    %c1_i32 = arith.constant 1 : i32
    %0 = arith.muli %arg0, %c1_i32 : i32
    %1 = arith.addi %0, %arg1 : i32
    %c1_i32_0 = arith.constant 1 : i32
    %2 = arith.minsi %1, %c1_i32_0 : i32
    %c0_i32 = arith.constant 0 : i32
    %c0_i32_1 = arith.constant 0 : i32
    return %2, %c0_i32 : i32, i32
  }
  func.func @transform_1(%arg0: i32, %arg1: i32) -> (i32, i32) {
    %c1_i32 = arith.constant 1 : i32
    %0 = arith.muli %arg0, %c1_i32 : i32
    %1 = arith.addi %0, %arg1 : i32
    %c1_i32_0 = arith.constant 1 : i32
    %2 = arith.minsi %1, %c1_i32_0 : i32
    %c0_i32 = arith.constant 0 : i32
    %c0_i32_1 = arith.constant 0 : i32
    return %2, %c0_i32 : i32, i32
  }
  func.func @transform_2(%arg0: i32, %arg1: i32) -> (i32, i32) {
    %c0_i32 = arith.constant 0 : i32
    %c0_i32_0 = arith.constant 0 : i32
    return %arg0, %c0_i32 : i32, i32
  }
  func.func @transform_3(%arg0: i32, %arg1: i32) -> (i32, i32) {
    %c0_i32 = arith.constant 0 : i32
    %c0_i32_0 = arith.constant 0 : i32
    return %arg0, %c0_i32 : i32, i32
  }
  func.func @transform_4(%arg0: i32, %arg1: i32) -> (i32, i32) {
    %c0_i32 = arith.constant 0 : i32
    %c0_i32_0 = arith.constant 0 : i32
    return %arg0, %c0_i32 : i32, i32
  }
}

</mosaic_0001>

<bundles_post_ra>
// kernel: tpu_custom_call.1
= control target key start
LH: loop header
LB: loop body
LE: loop exit
PB: predicated region body
PF: predicated region fallthrough
CT: control target
= control target key end

     0   :  { %s1385_s0 = inlined_call_operand.hbm [shape: f32[16,128], index: 0, kind: input, shape index: {}]   ;;  %s1386_s1 = inlined_call_operand.hbm [shape: f32[16,128], index: 1, kind: input, shape index: {}]   ;;  %s1387_s2 = inlined_call_operand.hbm [shape: f32[16,128], index: 2, kind: output, shape index: {0}]   ;;  %s1388_s3 = inlined_call_operand.hbm [shape: f32[16,128], index: 3, kind: output, shape index: {1}]   ;;  %s1389_s4 = inlined_call_operand.hbm [shape: f32[16,128], index: 4, kind: output, shape index: {2}]  }
   0x1   :  { %1397 = sst [smem:[#allocation17_spill]] %s1385_s0 }
   0x2   :  { %10 = vsyncpa [#allocation3], 0 }
   0x3   :  { %12 = vsyncpa [#allocation3 + $0x1], 0 }
   0x4   :  { %13 = vsyncpa [#allocation6], 0 }
   0x5   :  { %15 = vsyncpa [#allocation6 + $0x1], 0 }
   0x6   :  { %16 = vsyncpa [#allocation4], 0 }
   0x7   :  { %18 = vsyncpa [#allocation4 + $0x1], 0 }
   0x8   :  { %19 = vsyncpa [#allocation9], 0 }
   0x9   :  { %21 = vsyncpa [#allocation9 + $0x1], 0  ;;  %s1019_s15 = smov 0   ;;  %s1021_s16 = smov 0  }
   0xa   :  { %s1023_s17 = smov 0   ;;  %s1025_s18 = smov 0  }
   0xb   :  { %s1027_s19 = smov 0   ;;  %s1029_s20 = smov 0  }
   0xc   :  { %s1031_s21 = smov 0   ;;  %s1033_s22 = smov 0  }
   0xd   :  { %s1035_s23 = smov 0  }
   0xe LB: > { %1398 = sst [smem:[#allocation15_spill]] %s980_s22  ;;  %s1063_s24 = sadd.s32 4294967295, %s984_s23   ;;  %s984_s23 = sphi %s1035_s23, %s27_s23   ;;  %s980_s22 = sphi %s1033_s22, %s1418_s22   ;;  %s976_s21 = sphi %s1031_s21, %s1417_s21   ;;  %s972_s20 = sphi %s1029_s20, %s1424_s20   ;;  %s968_s19 = sphi %s1027_s19, %s1423_s19   ;;  %s964_s18 = sphi %s1025_s18, %s1422_s18   ;;  %s960_s17 = sphi %s1023_s17, %s1421_s17   ;;  %s956_s16 = sphi %s1021_s16, %s1420_s16   ;;  %s952_s15 = sphi %s1019_s15, %s1419_s15  }
   0xf   : > { %s1390_s25 = sadd.s32 4294967294, %s984_s23   ;;  %s39_s26 = sadd.s32 1, %s980_s22 }
  0x10   : > { %p44_p0 = scmp.lt.s32.totalorder %s980_s22, 1  ;;  %p41_p1 = scmp.ge.s32.totalorder %s39_s26, 2 }
  0x11   : > { %s52_s27 = sadd.s32 1, %s972_s20  ;;  %p59_p2 = scmp.ne.s32.totalorder %s972_s20, %s968_s19 }
  0x12   : > { %s1070_s28 = scalar_select %p44_p0, %s980_s22, 1 }
  0x13   : > { %s1426_s26 = smov (%p41_p1, %s39_s26), 0  ;;  %p60_p3 = scmp.eq.s32.totalorder %s984_s23, 0 }
  0x14   : > { %1399 = sst [smem:[#allocation16_spill]] %s1426_s26  ;;  %p47_p4 = scmp.lt.s32.totalorder %s1426_s26, 1 }
  0x15   : > { %p65_p5 = scmp.ne.s32.totalorder %s968_s19, %s964_s18  ;;  %p1079_p6 = por %p60_p3, %p59_p2 }
  0x16   : > { %p66_p7 = scmp.eq.s32.totalorder %s1063_s24, 0  ;;  %s107_s6 = ssub.s32 %s980_s22, %s1426_s26 }
  0x17   : > { %s48_s30 = scalar_select %p47_p4, %s1426_s26, 1 }
  0x18   : > { %p1085_p8 = por %p66_p7, %p65_p5  ;;  %p108_p9 = scmp.eq.s32.totalorder %s107_s6, 0 }
  0x19   : > { %s49_s7 = ssub.s32 %s1070_s28, %s48_s30  ;;  %s110_s8 = sadd.s32 1, %s960_s17 }
  0x1a   : > { %s1401_s5 = scalar_select %p1085_p8, 1, 0 }
  0x1b   : > { %p50_p10 = scmp.eq.s32.totalorder %s49_s7, 0  ;;  %p120_p11 = scmp.ne.s32.totalorder %s960_s17, %s956_s16 }
  0x1c   : > { %s1094_s9 = scalar_select %p108_p9, %s960_s17, %s110_s8  }
  0x1d   : > { %s1097_s10 = scalar_select %p50_p10, %s972_s20, %s52_s27  }
  0x1e   : > { %p121_p12 = scmp.eq.s32.totalorder %s1063_s24, 1  ;;  %p126_p13 = scmp.ne.s32.totalorder %s956_s16, %s952_s15 }
  0x1f   : > { %p127_p0 = scmp.eq.s32.totalorder %s1390_s25, 1  ;;  %p669_p4 = scmp.lt.s32.totalorder %s984_s23, 2 }
  0x20   : > { %p1106_p1 = por %p121_p12, %p120_p11  ;;  %s1117_s13 = sand.u32 1, %s972_s20  }
  0x21   : > { %p1111_p3 = por %p127_p0, %p126_p13  ;;  %s1392_s14 = sshll.u32 %s1070_s28, 7 }
  0x22   : > { %s1402_s11 = scalar_select %p1106_p1, 1, 0 }
  0x23   : > { %s1403_s12 = scalar_select %p1111_p3, 1, 0 }
  0x24   : > { %s1391_s18 = sshll.u32 %s1117_s13, 3  ;;  %s1404_s0 = sld [smem:[#allocation17_spill]] }
  0x25   : > { %s203_s7 = scalar_lea.vmem [#allocation2], %s1391_s18  ;;  %p1132_p5 = pnand %p669_p4, %p1079_p6 }
  0x26   : > { %s213_s8 = sshll.u32 %s203_s7, 4  ;;  %s200_s27 = scalar_lea.sflag [#allocation3], %s1117_s13  ;;  %s1136_s8 = int_to_ptr.vmem [resolvable:$true] %s213_s8 }
  0x27   : > { %p756_p11 = pneg %p1132_p5 }
  0x2a   : > { %s1126_s6 = scalar_lea.hbm %s1404_s0, %s1392_s14  ;;  %s759_s18 = scalar_lea.hbm %s1404_s0, 256 }
  0x2b   : > { %s754_s30 = scalar_lea.hbm %s1126_s6, 128  ;;  %p760_p6 = scmp.lt.u32.totalorder %s1126_s6, %s1404_s0 }
  0x2c   : > { %p755_p10 = scmp.ne.s32.totalorder %s1126_s6, %s754_s30  ;;  %p761_p0 = scmp.lt.u32.totalorder %s759_s18, %s754_s30 }
  0x2d   : > { %p763_p2 = scmp.lt.u32.totalorder %s754_s30, %s1126_s6 }
  0x2e   : > { %p757_p12 = pnand %p756_p11, %p755_p10  ;;  %p762_p4 = por %p761_p0, %p760_p6 }
  0x30   : > { %p758_p13 = pneg %p757_p12  ;;  %p764_p7 = por %p763_p2, %p762_p4 }
  0x32   : > { %p765_p9 = pnand %p764_p7, %p758_p13 }
  0x34   : > { %768 = shalt.err (!%p765_p9)
}
  0x35   : > { %s769_s22 = scalar_lea.vmem %s1136_s8, 128  ;;  %s986_s29 = smov [#allocation2]  }
  0x36   : > { %p770_p10 = scmp.ne.s32.totalorder %s1136_s8, %s769_s22  ;;  %s774_s7 = sshll.u32 %s986_s29, 4  ;;  %s775_s7 = int_to_ptr.vmem [resolvable:$false] %s774_s7 }
  0x37   : > { %s776_s26 = scalar_lea.vmem %s775_s7, 256  ;;  %p777_p1 = scmp.lt.s32.totalorder %s1136_s8, %s775_s7 }
  0x38   : > { %p772_p12 = pnand %p770_p10, %p756_p11  ;;  %p778_p6 = scmp.lt.s32.totalorder %s776_s26, %s769_s22 }
  0x3a   : > { %p773_p3 = pneg %p772_p12  ;;  %p779_p0 = por %p778_p6, %p777_p1 }
  0x3c   : > { %p780_p2 = pnand %p779_p0, %p773_p3 }
  0x3e   : > { %783 = shalt.err (!%p780_p2)
}
  0x3f   : > { %655 = dma.hbm_to_vmem [thread:$0]  (!%p1132_p5), %s1126_s6, 128, %s1136_s8, %s200_s27  }
  0x40   : > { %p1406_p7 = scmp.lt.s32.totalorder %s984_s23, 3  ;;  %p1407_p9 = scmp.ge.s32.totalorder %s984_s23, 1 }
  0x41   : > { %s1409_s22 = sshll.u32 %s1070_s28, 7  ;;  %s1410_s7 = sshll.u32 %s1117_s13, 3 }
  0x42   : > { %p1170_p13 = pnand %p1407_p9, %p1406_p7  ;;  %s1179_s29 = scalar_lea.hbm %s1386_s1, %s1409_s22 }
  0x43   : > { %s224_s26 = scalar_lea.vmem [#allocation5], %s1410_s7  ;;  %s221_s6 = scalar_lea.sflag [#allocation6], %s1117_s13 }
  0x44   : > { %s1408_s14 = scalar_select %p1170_p13, 1, 0 }
  0x45   : > { %s234_s0 = sshll.u32 %s224_s26, 4  ;;  %s784_s8 = scalar_lea.hbm %s1179_s29, 128  ;;  %s235_s0 = int_to_ptr.vmem [resolvable:$true] %s234_s0 }
  0x46   : > { %p785_p1 = scmp.ne.s32.totalorder %s1179_s29, %s784_s8  ;;  %s789_s22 = scalar_lea.hbm %s1386_s1, 256 }
  0x47   : > { %p790_p10 = scmp.lt.u32.totalorder %s1179_s29, %s1386_s1  ;;  %p791_p12 = scmp.lt.u32.totalorder %s789_s22, %s784_s8 }
  0x48   : > { %p787_p3 = pnand %p785_p1, %p756_p11  ;;  %p793_p0 = scmp.lt.u32.totalorder %s784_s8, %s1179_s29 }
  0x49   : > { %p792_p6 = por %p791_p12, %p790_p10 }
  0x4a   : > { %p788_p4 = pneg %p787_p3 }
  0x4b   : > { %p794_p2 = por %p793_p0, %p792_p6 }
  0x4d   : > { %p795_p7 = pnand %p794_p2, %p788_p4 }
  0x4f   : > { %798 = shalt.err (!%p795_p7)
}
  0x50   : > { %s799_s13 = scalar_lea.vmem %s235_s0, 128  ;;  %s987_s7 = smov [#allocation5]  }
  0x51   : > { %p800_p9 = scmp.ne.s32.totalorder %s235_s0, %s799_s13  ;;  %s804_s26 = sshll.u32 %s987_s7, 4  ;;  %s805_s26 = int_to_ptr.vmem [resolvable:$false] %s804_s26 }
  0x52   : > { %s806_s28 = scalar_lea.vmem %s805_s26, 256  ;;  %p807_p8 = scmp.lt.s32.totalorder %s235_s0, %s805_s26 }
  0x53   : > { %p802_p1 = pnand %p800_p9, %p756_p11  ;;  %p808_p13 = scmp.lt.s32.totalorder %s806_s28, %s799_s13 }
  0x55   : > { %p803_p3 = pneg %p802_p1  ;;  %p809_p10 = por %p808_p13, %p807_p8 }
  0x57   : > { %p810_p12 = pnand %p809_p10, %p803_p3 }
  0x59   : > { %813 = shalt.err (!%p810_p12)
}
  0x5a   : > { %658 = dma.hbm_to_vmem [thread:$0]  (!%p1132_p5), %s1179_s29, 128, %s235_s0, %s221_s6  }
  0x5b   : > { %p1411_p4 = scmp.ne.s32.totalorder %s1408_s14, 0 }
  0x5c   : > { %s245_s8 = sand.u32 (!%p1411_p4), 1, %s968_s19   ;;  %p1412_p11 = scmp.ne.s32.totalorder (!%p1411_p4), %s1401_s5, 0 }
  0x5d   : > { %243 = sbr.rel (%p1411_p4) target bundleno = 269 (0x10d), region = 28  ;;  %s624_s27 = sshll.u32 (!%p1411_p4), %s245_s8, 3 }
  0x5e   : > { %s246_s22 = scalar_lea.sflag (!%p1411_p4), [#allocation3], %s245_s8  ;;  %s1206_s18 = scalar_lea.vmem (!%p1411_p4), [#allocation2], %s624_s27 }
  0x64   : > { %935 = dma.done.wait (%p1412_p11), %s246_s22, 128  }
  0x65   : > { %937 = vsyncadd (%p1412_p11), %s246_s22, 4294967168  ;;  %s255_s30 = scalar_lea.sflag [#allocation6], %s245_s8  ;;  %s1212_s25 = scalar_lea.vmem [#allocation5], %s624_s27 }
  0x66   : > { %939 = dma.done.wait (%p1412_p11), %s255_s30, 128  }
  0x67   : > { %941 = vsyncadd (%p1412_p11), %s255_s30, 4294967168  ;;  %s281_s0 = sand.u32 1, %s956_s16   ;;  %s629_s14 = sshll.u32 %s976_s21, 3  ;;  %v988_v0 = vmov 0.0  }
  0x68   : > { %s626_s29 = sshll.u32 %s281_s0, 3  ;;  %s1224_s6 = sadd.s32 8, %s629_s14 }
  0x69   : > { %s1226_s13 = scalar_lea.vmem [#allocation7], %s626_s29  ;;  %s1229_s7 = scalar_lea.vmem [#allocation8], %s626_s29 }
  0x6a   : > { %308 = vst [vmem:[%s1226_s13] sm:$0xff] %v988_v0  ;;  %309 = vst [vmem:[%s1229_s7] sm:$0xff] %v988_v0  ;;  %s1232_s5 = scalar_lea.vmem [#allocation10], %s626_s29  ;;  %p630_p8 = scmp.gt.s32.totalorder %s1224_s6, 16 }
  0x6b   : > { %310 = vst [vmem:[%s1232_s5] sm:$0xff] %v988_v0  ;;  %v319_v1 = vld [vmem:[%s1206_s18] sm:$0xff] (!%p630_p8)  ;;  %v320_v2 = vld [vmem:[%s1212_s25] sm:$0xff] (!%p630_p8)  ;;  %v989_v4 = vmov (!%p630_p8), 0.0  }
  0x6c   : > { %318 = sbr.rel (%p630_p8) target bundleno = 148 (0x94), region = 44  ;;  %v323_v3 = vand.u32 (!%p630_p8), 2147483647, %v319_v1  ;;  %vm343_vm0 = vcmp.ne.f32.partialorder (!%p630_p8), %v320_v2, 0.0  ;;  %v321_v14 = vsub.f32 (!%p630_p8), 0.0, %v319_v1  ;;  %v337_v16 = vsub.f32 (!%p630_p8), 1.0, %v320_v2 }
  0x6d   : > { %v631_v5 = vsel (!%p630_p8), %vm343_vm0, 1.0, %v989_v4 }
  0x6e   : > { %v324_v7 = vsub.f32 (!%p630_p8), 0.0, %v323_v3  ;;  %v322_v19 = vmax.f32 (!%p630_p8), %v321_v14, 0.0  ;;  %v338_v21 = vmul.f32 (!%p630_p8), %v337_v16, %v319_v1 }
  0x70   : > { %v325_v9 = vmul.f32 (!%p630_p8), 1.442695, %v324_v7 }
  0x71   : > { %v347_v24 = vld [vmem:[%s1226_s13] sm:$0xff] (!%p630_p8)  ;;  %v350_v25 = vld [vmem:[%s1229_s7] sm:$0xff] (!%p630_p8) }
  0x72   : > { %v353_v6 = vld [vmem:[%s1232_s5] sm:$0xff] (!%p630_p8)  ;;  %746 = vpow2.f32 (!%p630_p8), %v325_v9 }
  0x73   : > { %v354_v8 = vadd.f32 %v631_v5, %v353_v6 }
  0x75   : > { %355 = vst [vmem:[%s1232_s5] sm:$0xff] %v354_v8 }
  0x7c   : > { %v747_v10 = vpop.eup %746 }
  0x7d   : > { %v327_v11 = vadd.f32 1.0, %v747_v10  ;;  %v330_v12 = vmul.f32 -0.5, %v747_v10  ;;  %v333_v15 = vand.u32 2147483647, %v747_v10 }
  0x7f   : > { %748 = vlog2.f32 %v327_v11  ;;  %v331_v13 = vadd.f32 1.0, %v330_v12  ;;  %vm334_vm1 = vcmp.lt.f32.partialorder %v333_v15, 0.0004427343 }
  0x81   : > { %v332_v17 = vmul.f32 %v747_v10, %v331_v13 }
  0x89   : > { %v749_v18 = vpop.eup %748 }
  0x8a   : > { %v329_v20 = vmul.f32 0.6931472, %v749_v18 }
  0x8c   : > { %v335_v22 = vsel %vm334_vm1, %v332_v17, %v329_v20 }
  0x8d   : > { %v336_v23 = vadd.f32 %v335_v22, %v322_v19 }
  0x8f   : > { %v339_v26 = vadd.f32 %v338_v21, %v336_v23  ;;  %v341_v27 = vmul.f32 %v336_v23, %v320_v2 }
  0x91   : > { %v348_v28 = vadd.f32 %v347_v24, %v339_v26  ;;  %v351_v29 = vadd.f32 %v350_v25, %v341_v27 }
  0x93   : > { %349 = vst [vmem:[%s1226_s13] sm:$0xff] %v348_v28  ;;  %352 = vst [vmem:[%s1229_s7] sm:$0xff] %v351_v29 }
  0x94 PF: > { %p632_p5 = scmp.le.s32.totalorder %s1224_s6, 16 }
  0x95   : > { %v361_v30 = vlaneseq (!%p632_p5)  ;;  %v363_v31 = vstv (!%p632_p5), %s629_s14  ;;  %v359_v33 = vld [vmem:[%s1206_s18] sm:$0xff] (!%p632_p5)  ;;  %v360_v34 = vld [vmem:[%s1212_s25] sm:$0xff] (!%p632_p5)  ;;  %v990_v40 = vmov (!%p632_p5), 0.0  }
  0x96   : > { %358 = sbr.rel (%p632_p5) target bundleno = 197 (0xc5), region = 48  ;;  %v400_v38 = vld [vmem:[%s1232_s5] sm:$0xff] (!%p632_p5) }
  0x97   : > { %v362_v32 = vshrl.u32 (!%p632_p5), %v361_v30, 7 }
  0x99   : > { %v364_v35 = vadd.s32 (!%p632_p5), %v363_v31, %v362_v32 }
  0x9a   : > { %v394_v59 = vld [vmem:[%s1226_s13] sm:$0xff] (!%p632_p5)  ;;  %v397_v60 = vld [vmem:[%s1229_s7] sm:$0xff] (!%p632_p5) }
  0x9b   : > { %vm365_vm2 = vcmp.lt.s32.totalorder (!%p632_p5), %v364_v35, 16 }
  0x9c   : > { %v366_v36 = vsel (!%p632_p5), %vm365_vm2, %v359_v33, -10000.0  ;;  %v367_v37 = vsel (!%p632_p5), %vm365_vm2, %v360_v34, 0.0 }
  0x9d   : > { %v370_v39 = vand.u32 2147483647, %v366_v36  ;;  %vm390_vm3 = vcmp.ne.f32.partialorder %v367_v37, 0.0  ;;  %v368_v49 = vsub.f32 0.0, %v366_v36  ;;  %v384_v51 = vsub.f32 1.0, %v367_v37 }
  0x9e   : > { %v633_v41 = vsel %vm390_vm3, 1.0, %v990_v40 }
  0x9f   : > { %v371_v42 = vsub.f32 0.0, %v370_v39  ;;  %v401_v43 = vadd.f32 %v633_v41, %v400_v38  ;;  %v369_v54 = vmax.f32 %v368_v49, 0.0  ;;  %v385_v56 = vmul.f32 %v384_v51, %v366_v36 }
  0xa1   : > { %v372_v44 = vmul.f32 1.442695, %v371_v42  ;;  %402 = vst [vmem:[%s1232_s5] sm:$0xff] %v401_v43 }
  0xa3   : > { %750 = vpow2.f32 %v372_v44 }
  0xad   : > { %v751_v45 = vpop.eup %750 }
  0xae   : > { %v374_v46 = vadd.f32 1.0, %v751_v45  ;;  %v377_v47 = vmul.f32 -0.5, %v751_v45  ;;  %v380_v50 = vand.u32 2147483647, %v751_v45 }
  0xb0   : > { %752 = vlog2.f32 %v374_v46  ;;  %v378_v48 = vadd.f32 1.0, %v377_v47  ;;  %vm381_vm4 = vcmp.lt.f32.partialorder %v380_v50, 0.0004427343 }
  0xb2   : > { %v379_v52 = vmul.f32 %v751_v45, %v378_v48 }
  0xba   : > { %v753_v53 = vpop.eup %752 }
  0xbb   : > { %v376_v55 = vmul.f32 0.6931472, %v753_v53 }
  0xbd   : > { %v382_v57 = vsel %vm381_vm4, %v379_v52, %v376_v55 }
  0xbe   : > { %v383_v58 = vadd.f32 %v382_v57, %v369_v54 }
  0xc0   : > { %v386_v61 = vadd.f32 %v385_v56, %v383_v58  ;;  %v388_v62 = vmul.f32 %v383_v58, %v367_v37 }
  0xc2   : > { %v395_v63 = vadd.f32 %v394_v59, %v386_v61  ;;  %v398_v0 = vadd.f32 %v397_v60, %v388_v62 }
  0xc4   : > { %396 = vst [vmem:[%s1226_s13] sm:$0xff] %v395_v63  ;;  %399 = vst [vmem:[%s1229_s7] sm:$0xff] %v398_v0 }
  0xc5 PF: > { %s408_s26 = sand.u32 1, %s1063_s24   ;;  %s1257_s28 = sshll.u32 %s976_s21, 7 }
  0xc6   : > { %s1263_s22 = scalar_lea.hbm %s1388_s3, %s1257_s28  ;;  %s440_s18 = sshll.u32 %s1229_s7, 4  ;;  %s1266_s18 = int_to_ptr.vmem [resolvable:$true] %s440_s18 }
  0xc7   : > { %s1272_s14 = scalar_lea.hbm %s1387_s2, %s1257_s28  ;;  %s1274_s21 = scalar_lea.sflag [#allocation9], %s408_s26 }
  0xc8   : > { %s814_s24 = scalar_lea.vmem %s1266_s18, 128  ;;  %p1413_p6 = scmp.ne.s32.totalorder %s1402_s11, 0 }
  0xc9   : > { %p815_p13 = scmp.ne.s32.totalorder %s1266_s18, %s814_s24  ;;  %s991_s29 = smov [#allocation8]  }
  0xca   : > { %s818_s6 = sshll.u32 %s991_s29, 4  ;;  %s819_s6 = int_to_ptr.vmem [resolvable:$false] %s818_s6 }
  0xcb   : > { %p816_p0 = pnand %p815_p13, %p1413_p6  ;;  %s820_s7 = scalar_lea.vmem %s819_s6, 256 }
  0xcc   : > { %p821_p7 = scmp.lt.s32.totalorder %s1266_s18, %s819_s6  ;;  %p822_p9 = scmp.lt.s32.totalorder %s820_s7, %s814_s24 }
  0xcd   : > { %p817_p2 = pneg %p816_p0 }
  0xce   : > { %p823_p1 = por %p822_p9, %p821_p7 }
  0xd0   : > { %p824_p3 = pnand %p823_p1, %p817_p2 }
  0xd2   : > { %827 = shalt.err (!%p824_p3)
}
  0xd3   : > { %s828_s26 = scalar_lea.hbm %s1263_s22, 128  ;;  %s832_s30 = scalar_lea.hbm %s1388_s3, 256 }
  0xd4   : > { %p829_p10 = scmp.ne.s32.totalorder %s1263_s22, %s828_s26  ;;  %p833_p11 = scmp.lt.u32.totalorder %s1263_s22, %s1388_s3 }
  0xd5   : > { %p834_p8 = scmp.lt.u32.totalorder %s832_s30, %s828_s26  ;;  %p836_p13 = scmp.lt.u32.totalorder %s828_s26, %s1263_s22 }
  0xd6   : > { %p830_p12 = pnand %p829_p10, %p1413_p6 }
  0xd7   : > { %p835_p5 = por %p834_p8, %p833_p11 }
  0xd8   : > { %p831_p4 = pneg %p830_p12 }
  0xd9   : > { %p837_p0 = por %p836_p13, %p835_p5 }
  0xdb   : > { %p838_p2 = pnand %p837_p0, %p831_p4 }
  0xdd   : > { %841 = shalt.err (!%p838_p2)
}
  0xde   : > { %647 = dma.vmem_to_hbm [thread:$0]  (%p1413_p6), %s1266_s18, 128, %s1263_s22, %s1274_s21  }
  0xdf   : > { %s427_s24 = sshll.u32 %s1226_s13, 4  ;;  %s1303_s8 = scalar_lea.hbm %s1389_s4, %s1257_s28  ;;  %s1305_s24 = int_to_ptr.vmem [resolvable:$true] %s427_s24 }
  0xe0   : > { %s453_s26 = sshll.u32 %s1232_s5, 4  ;;  %s404_s27 = scalar_lea.sflag [#allocation4], %s281_s0  ;;  %s454_s26 = int_to_ptr.vmem [resolvable:$true] %s453_s26 }
  0xe1   : > { %s842_s30 = scalar_lea.vmem %s1305_s24, 128  ;;  %s992_s22 = smov [#allocation7]  }
  0xe2   : > { %p843_p7 = scmp.ne.s32.totalorder %s1305_s24, %s842_s30  ;;  %s846_s13 = sshll.u32 %s992_s22, 4  ;;  %s847_s13 = int_to_ptr.vmem [resolvable:$false] %s846_s13 }
  0xe3   : > { %s848_s18 = scalar_lea.vmem %s847_s13, 256  ;;  %p849_p3 = scmp.lt.s32.totalorder %s1305_s24, %s847_s13 }
  0xe4   : > { %p844_p9 = pnand %p843_p7, %p1413_p6  ;;  %p850_p10 = scmp.lt.s32.totalorder %s848_s18, %s842_s30 }
  0xe6   : > { %p845_p1 = pneg %p844_p9  ;;  %p851_p12 = por %p850_p10, %p849_p3 }
  0xe8   : > { %p852_p4 = pnand %p851_p12, %p845_p1 }
  0xea   : > { %855 = shalt.err (!%p852_p4)
}
  0xeb   : > { %s856_s0 = scalar_lea.hbm %s1272_s14, 128  ;;  %s860_s29 = scalar_lea.hbm %s1387_s2, 256 }
  0xec   : > { %p857_p11 = scmp.ne.s32.totalorder %s1272_s14, %s856_s0  ;;  %p861_p13 = scmp.lt.u32.totalorder %s1272_s14, %s1387_s2 }
  0xed   : > { %p862_p0 = scmp.lt.u32.totalorder %s860_s29, %s856_s0  ;;  %p864_p7 = scmp.lt.u32.totalorder %s856_s0, %s1272_s14 }
  0xee   : > { %p858_p8 = pnand %p857_p11, %p1413_p6 }
  0xef   : > { %p863_p2 = por %p862_p0, %p861_p13 }
  0xf0   : > { %p859_p5 = pneg %p858_p8 }
  0xf1   : > { %p865_p9 = por %p864_p7, %p863_p2 }
  0xf3   : > { %p866_p1 = pnand %p865_p9, %p859_p5 }
  0xf5   : > { %869 = shalt.err (!%p866_p1)
}
  0xf6   : > { %646 = dma.vmem_to_hbm [thread:$0]  (%p1413_p6), %s1305_s24, 128, %s1272_s14, %s404_s27  }
  0xf7   : > { %s870_s30 = scalar_lea.vmem %s454_s26, 128  ;;  %s993_s22 = smov [#allocation10]  }
  0xf8   : > { %p871_p3 = scmp.ne.s32.totalorder %s454_s26, %s870_s30  ;;  %s874_s13 = sshll.u32 %s993_s22, 4  ;;  %s875_s13 = int_to_ptr.vmem [resolvable:$false] %s874_s13 }
  0xf9   : > { %s876_s18 = scalar_lea.vmem %s875_s13, 256  ;;  %p877_p4 = scmp.lt.s32.totalorder %s454_s26, %s875_s13 }
  0xfa   : > { %p872_p10 = pnand %p871_p3, %p1413_p6  ;;  %p878_p11 = scmp.lt.s32.totalorder %s876_s18, %s870_s30 }
  0xfc   : > { %p873_p12 = pneg %p872_p10  ;;  %p879_p8 = por %p878_p11, %p877_p4 }
  0xfe   : > { %p880_p5 = pnand %p879_p8, %p873_p12 }
 0x100   : > { %883 = shalt.err (!%p880_p5)
}
 0x101   : > { %s884_s5 = scalar_lea.hbm %s1303_s8, 128  ;;  %s888_s27 = scalar_lea.hbm %s1389_s4, 256 }
 0x102   : > { %p885_p13 = scmp.ne.s32.totalorder %s1303_s8, %s884_s5  ;;  %p889_p7 = scmp.lt.u32.totalorder %s1303_s8, %s1389_s4 }
 0x103   : > { %p890_p9 = scmp.lt.u32.totalorder %s888_s27, %s884_s5  ;;  %p892_p3 = scmp.lt.u32.totalorder %s884_s5, %s1303_s8 }
 0x104   : > { %p886_p0 = pnand %p885_p13, %p1413_p6 }
 0x105   : > { %p891_p1 = por %p890_p9, %p889_p7 }
 0x106   : > { %p887_p2 = pneg %p886_p0 }
 0x107   : > { %p893_p10 = por %p892_p3, %p891_p1 }
 0x109   : > { %p894_p12 = pnand %p893_p10, %p887_p2 }
 0x10b   : > { %897 = shalt.err (!%p894_p12)
}
 0x10c   : > { %648 = dma.vmem_to_hbm [thread:$0]  (%p1413_p6), %s454_s26, 128, %s1303_s8, %s1274_s21  }
 0x10d PF: > { %s465_s25 = sand.u32 1, %s952_s15   ;;  %p1414_p4 = scmp.ne.s32.totalorder %s1403_s12, 0 }
 0x10e   : > { %p1415_p11 = scmp.ge.s32.totalorder %s984_s23, 2  ;;  %s466_s29 = scalar_lea.sflag [#allocation4], %s465_s25 }
 0x110   : > { %p660_p8 = pnand %p1415_p11, %p1414_p4 }
 0x112   : > { %943 = dma.done.wait (!%p660_p8), %s466_s29, 128  }
 0x113   : > { %945 = vsyncadd (!%p660_p8), %s466_s29, 4294967168  ;;  %s1416_s6 = sadd.s32 4294967294, %s984_s23  }
 0x114   : > { %s474_s7 = sand.u32 1, %s1416_s6  }
 0x115   : > { %s475_s30 = scalar_lea.sflag [#allocation9], %s474_s7 }
 0x116   : > { %947 = dma.done.wait (!%p660_p8), %s475_s30, 256  }
 0x117   : > { %949 = vsyncadd (!%p660_p8), %s475_s30, 4294967040  ;;  %s27_s23 = sadd.s32 1, %s984_s23   ;;  %s1417_s21 = sld [smem:[#allocation15_spill]] }
 0x118   : > { %p24_p6 = scmp.ge.s32.totalorder %s27_s23, 4   ;;  %s1418_s22 = sld [smem:[#allocation16_spill]] }
 0x119   : > { %s1419_s15 = smov %s956_s16  ;;  %s1420_s16 = smov %s960_s17 }
 0x11a   : > { %s1421_s17 = smov %s1094_s9  ;;  %s1422_s18 = smov %s968_s19 }
 0x11b   : > { %s1423_s19 = smov %s972_s20  ;;  %s1424_s20 = smov %s1097_s10 }
 0x11c   :  { %26 = sbr.rel (!%p24_p6) target bundleno = 14 (0xe), region = 130 }
 0x123   :  { %489 = vsyncpa [#allocation3], 1 }
 0x124   :  { %491 = vsyncpa [#allocation3 + $0x1], 1 }
 0x125   :  { %492 = vsyncpa [#allocation6], 1 }
 0x126   :  { %494 = vsyncpa [#allocation6 + $0x1], 1 }
 0x127   :  { %495 = vsyncpa [#allocation4], 1 }
 0x128   :  { %497 = vsyncpa [#allocation4 + $0x1], 1 }
 0x129   :  { %498 = vsyncpa [#allocation9], 1 }
 0x12a   :  { %500 = vsyncpa [#allocation9 + $0x1], 1 }

</bundles_post_ra>
